<compile_context>
chip_gen: v6e
topology: v6e:2x2x1
jax: 0.10.0
libtpu: 0.0.40
codegen_flags: <defaults>
</compile_context>

<pallas_src>
import jax
import jax.numpy as jnp
from jax.experimental import pallas as pl
from jax.experimental.pallas import tpu as pltpu


def _round_up(x, m):
    return (x + m - 1) // m * m


def _make_kernel(n_valid, n_value_elems, tn, c):
    inv_n = 1.0 / float(n_valid)
    inv_nv = 1.0 / float(n_value_elems)

    def kernel(logits_ref, labels_ref, pv_ref, v_ref,
               total_ref, mse_ref, ce_ref,
               ce_acc, mse_acc):
        pid = pl.program_id(0)

        @pl.when(pid == 0)
        def _init():
            ce_acc[0] = jnp.float32(0.0)
            # MSE term: values are tiny vs. logits, computed once (lane-dense).
            pv = pv_ref[...].astype(jnp.float32)
            v = v_ref[...].astype(jnp.float32)
            d = pv - v
            mse_acc[0] = jnp.sum(d * d)

        # --- Cross entropy partial sum for this batch tile ---------------
        logits = logits_ref[...].astype(jnp.float32)          # (tn, c)
        labels = labels_ref[...]                               # (tn, 1) int32

        col_ids = jax.lax.broadcasted_iota(jnp.int32, (tn, c), 1)
        one_hot = col_ids == labels                            # (tn, c) bool
        m = jnp.max(logits, axis=-1, keepdims=True)            # (tn, 1)
        lse = m + jnp.log(jnp.sum(jnp.exp(logits - m), axis=-1, keepdims=True))
        tgt = jnp.sum(jnp.where(one_hot, logits, 0.0), axis=-1, keepdims=True)
        per_row = lse - tgt                                     # (tn, 1)

        # Mask rows that are only padding (last tile when TN does not divide N).
        row_ids = pid * tn + jax.lax.broadcasted_iota(jnp.int32, (tn, 1), 0)
        per_row = jnp.where(row_ids < n_valid, per_row, 0.0)

        ce_acc[0] = ce_acc[0] + jnp.sum(per_row)

        @pl.when(pid == pl.num_programs(0) - 1)
        def _finalize():
            ce = ce_acc[0] * jnp.float32(inv_n)
            mse = mse_acc[0] * jnp.float32(inv_nv)
            ce_ref[0] = ce
            mse_ref[0] = mse
            total_ref[0] = jnp.float32(0.01) * mse + ce

    return kernel


def mse_cross_entropy_loss(pred_move, move, pred_value, value, *, tile_n=512):
    """Returns (0.01 * mse + ce, mse, ce) as float32 scalars.

    pred_move: [N, C] logits (f32 or bf16), move: [N] int labels,
    pred_value/value: any matching shape (flattened for the MSE).
    """
    n, c = pred_move.shape

    # Batch tile: multiple of 8 sublanes, capped so tiny inputs use one tile.
    tn = min(_round_up(tile_n, 8), _round_up(n, 8))
    n_pad = _round_up(n, tn)
    grid_n = n_pad // tn

    logits = pred_move
    labels2d = move.astype(jnp.int32).reshape(n, 1)
    if n_pad != n:
        logits = jnp.pad(logits, ((0, n_pad - n), (0, 0)))
        labels2d = jnp.pad(labels2d, ((0, n_pad - n), (0, 0)))

    # Lane-dense layout for the MSE operands.
    pv2d = pred_value.reshape(1, -1)
    v2d = value.reshape(1, -1)
    n_value_elems = pv2d.shape[1]

    scalar_out = jax.ShapeDtypeStruct((1,), jnp.float32)
    kernel = _make_kernel(n, n_value_elems, tn, c)

    total, mse, ce = pl.pallas_call(
        kernel,
        out_shape=(scalar_out, scalar_out, scalar_out),
        grid=(grid_n,),
        in_specs=[
            pl.BlockSpec((tn, c), lambda i: (i, 0)),
            pl.BlockSpec((tn, 1), lambda i: (i, 0)),
            pl.BlockSpec((1, n_value_elems), lambda i: (0, 0)),
            pl.BlockSpec((1, n_value_elems), lambda i: (0, 0)),
        ],
        out_specs=(
            pl.BlockSpec(memory_space=pltpu.SMEM),
            pl.BlockSpec(memory_space=pltpu.SMEM),
            pl.BlockSpec(memory_space=pltpu.SMEM),
        ),
        scratch_shapes=[
            pltpu.SMEM((1,), jnp.float32),   # CE partial sum
            pltpu.SMEM((1,), jnp.float32),   # MSE sum
        ],
        compiler_params=pltpu.CompilerParams(
            dimension_semantics=("arbitrary",)),
    )(logits, labels2d, pv2d, v2d)
    return total[0], mse[0], ce[0]


def _reference(pred_move, move, pred_value, value):
    logits = pred_move.astype(jnp.float32)
    logp = jax.nn.log_softmax(logits, axis=-1)
    ce = -jnp.mean(jnp.take_along_axis(
        logp, move.astype(jnp.int32).reshape(-1, 1), axis=-1))
    mse = jnp.mean((pred_value.astype(jnp.float32)
                    - value.astype(jnp.float32)) ** 2)
    return 0.01 * mse + ce, mse, ce


def _check(got, ref, name):
    assert jnp.allclose(got, ref, rtol=1e-5, atol=1e-5), (name, got, ref)


if __name__ == "__main__":
    key = jax.random.PRNGKey(0)
    k1, k2, k3, k4, k5, k6, k7, k8 = jax.random.split(key, 8)

    # Case 1: small single-tile case (batch=8, classes=128).
    N, C = 8, 128
    pred_move = jax.random.normal(k1, (N, C), dtype=jnp.float32)
    move = jax.random.randint(k2, (N,), 0, C, dtype=jnp.int32)
    pred_value = jax.random.normal(k3, (N, 1), dtype=jnp.float32)
    value = jax.random.normal(k4, (N, 1), dtype=jnp.float32)

    total, mse, ce = mse_cross_entropy_loss(pred_move, move, pred_value, value)
    jax.block_until_ready((total, mse, ce))
    r_total, r_mse, r_ce = _reference(pred_move, move, pred_value, value)
    _check(total, r_total, "total"); _check(mse, r_mse, "mse"); _check(ce, r_ce, "ce")

    # Case 2: multi-tile grid with a padded last tile (N=100 not divisible by 64).
    N2, C2 = 100, 128
    pred_move2 = jax.random.normal(k5, (N2, C2), dtype=jnp.float32)
    move2 = jax.random.randint(k6, (N2,), 0, C2, dtype=jnp.int32)
    pred_value2 = jax.random.normal(k7, (N2, 1), dtype=jnp.float32)
    value2 = jax.random.normal(k8, (N2, 1), dtype=jnp.float32)

    total2, mse2, ce2 = mse_cross_entropy_loss(
        pred_move2, move2, pred_value2, value2, tile_n=64)
    jax.block_until_ready((total2, mse2, ce2))
    r_total2, r_mse2, r_ce2 = _reference(pred_move2, move2, pred_value2, value2)
    _check(total2, r_total2, "total2"); _check(mse2, r_mse2, "mse2"); _check(ce2, r_ce2, "ce2")

    print("KERNEL_OK")
</pallas_src>

<mosaic_0001>
module attributes {stable_mosaic.version = 11 : i64} {
  func.func @kernel(%arg0: i32, %arg1: memref<8x128xf32, #tpu.memory_space<vmem>>, %arg2: memref<8x1xi32, #tpu.memory_space<vmem>>, %arg3: memref<1x8xf32, #tpu.memory_space<vmem>>, %arg4: memref<1x8xf32, #tpu.memory_space<vmem>>, %arg5: memref<1xf32, #tpu.memory_space<smem>>, %arg6: memref<1xf32, #tpu.memory_space<smem>>, %arg7: memref<1xf32, #tpu.memory_space<smem>>, %arg8: memref<1xf32, #tpu.memory_space<smem>>, %arg9: memref<1xf32, #tpu.memory_space<smem>>) attributes {dimension_semantics = [#tpu.dimension_semantics<arbitrary>], iteration_bounds = array<i64: 1>, scalar_prefetch = 0 : i64, scratch_operands = 2 : i64, tpu.core_type = #tpu.core_type<tc>, window_params = [{transform_indices = @transform_0, window_bounds = array<i64: 8, 128>}, {transform_indices = @transform_1, window_bounds = array<i64: 8, 1>}, {pipeline_mode = #tpu.pipeline_mode<synchronous>, transform_indices = @transform_2, window_bounds = array<i64: 1, 8>}, {pipeline_mode = #tpu.pipeline_mode<synchronous>, transform_indices = @transform_3, window_bounds = array<i64: 1, 8>}, {transform_indices = @transform_4, window_bounds = array<i64: 1>}, {transform_indices = @transform_5, window_bounds = array<i64: 1>}, {transform_indices = @transform_6, window_bounds = array<i64: 1>}]} {
    %c0_i32 = arith.constant 0 : i32
    %0 = arith.cmpi eq, %arg0, %c0_i32 : i32
    %1 = arith.extui %0 : i1 to i32
    %c0_i32_0 = arith.constant 0 : i32
    %2 = arith.cmpi ne, %1, %c0_i32_0 : i32
    scf.if %2 {
      %cst_14 = arith.constant 0.000000e+00 : f32
      %c0_15 = arith.constant 0 : index
      %40 = memref.load %arg8[%c0_15] : memref<1xf32, #tpu.memory_space<smem>>
      memref.store %cst_14, %arg8[%c0_15] : memref<1xf32, #tpu.memory_space<smem>>
      %c0_16 = arith.constant 0 : index
      %c0_17 = arith.constant 0 : index
      %41 = vector.load %arg3[%c0_16, %c0_17] : memref<1x8xf32, #tpu.memory_space<vmem>>, vector<1x8xf32>
      %c0_18 = arith.constant 0 : index
      %c0_19 = arith.constant 0 : index
      %42 = vector.load %arg4[%c0_18, %c0_19] : memref<1x8xf32, #tpu.memory_space<vmem>>, vector<1x8xf32>
      %43 = arith.subf %41, %42 : vector<1x8xf32>
      %44 = arith.mulf %43, %43 : vector<1x8xf32>
      %45 = vector.shape_cast %44 : vector<1x8xf32> to vector<1x1x8xf32>
      %cst_20 = arith.constant dense<0.000000e+00> : vector<1xf32>
      %46 = vector.multi_reduction <add>, %45, %cst_20 [1, 2] : vector<1x1x8xf32> to vector<1xf32>
      %47 = vector.shape_cast %46 : vector<1xf32> to vector<1x1x1xf32>
      %48 = vector.extract %47[0, 0, 0] : f32 from vector<1x1x1xf32>
      %c0_21 = arith.constant 0 : index
      %49 = memref.load %arg9[%c0_21] : memref<1xf32, #tpu.memory_space<smem>>
      memref.store %48, %arg9[%c0_21] : memref<1xf32, #tpu.memory_space<smem>>
    } else {
    }
    %c0 = arith.constant 0 : index
    %c0_1 = arith.constant 0 : index
    %3 = vector.load %arg1[%c0, %c0_1] : memref<8x128xf32, #tpu.memory_space<vmem>>, vector<8x128xf32>
    %c0_2 = arith.constant 0 : index
    %c0_3 = arith.constant 0 : index
    %4 = vector.load %arg2[%c0_2, %c0_3] : memref<8x1xi32, #tpu.memory_space<vmem>>, vector<8x1xi32>
    %5 = tpu.iota {dimensions = array<i32: 1>} : vector<8x128xi32>
    %6 = vector.broadcast %4 : vector<8x1xi32> to vector<8x128xi32>
    %7 = arith.cmpi eq, %5, %6 : vector<8x128xi32>
    %cst = arith.constant dense<0xFF800000> : vector<8xf32>
    %8 = vector.multi_reduction <maximumf>, %3, %cst [1] : vector<8x128xf32> to vector<8xf32>
    %9 = vector.shape_cast %8 : vector<8xf32> to vector<8x1xf32>
    %10 = vector.broadcast %9 : vector<8x1xf32> to vector<8x128xf32>
    %11 = arith.subf %3, %10 : vector<8x128xf32>
    %12 = math.exp %11 : vector<8x128xf32>
    %cst_4 = arith.constant dense<0.000000e+00> : vector<8xf32>
    %13 = vector.multi_reduction <add>, %12, %cst_4 [1] : vector<8x128xf32> to vector<8xf32>
    %14 = vector.shape_cast %13 : vector<8xf32> to vector<8x1xf32>
    %15 = math.log %14 : vector<8x1xf32>
    %16 = arith.addf %9, %15 : vector<8x1xf32>
    %cst_5 = arith.constant 0.000000e+00 : f32
    %17 = vector.broadcast %cst_5 : f32 to vector<8x128xf32>
    %18 = arith.select %7, %3, %17 : vector<8x128xi1>, vector<8x128xf32>
    %cst_6 = arith.constant dense<0.000000e+00> : vector<8xf32>
    %19 = vector.multi_reduction <add>, %18, %cst_6 [1] : vector<8x128xf32> to vector<8xf32>
    %20 = vector.shape_cast %19 : vector<8xf32> to vector<8x1xf32>
    %21 = arith.subf %16, %20 : vector<8x1xf32>
    %c8_i32 = arith.constant 8 : i32
    %22 = arith.muli %arg0, %c8_i32 : i32
    %23 = tpu.iota {dimensions = array<i32: 0>} : vector<8x1xi32>
    %24 = vector.broadcast %22 : i32 to vector<8x1xi32>
    %25 = arith.addi %24, %23 : vector<8x1xi32>
    %c8_i32_7 = arith.constant 8 : i32
    %26 = vector.broadcast %c8_i32_7 : i32 to vector<8x1xi32>
    %27 = arith.cmpi slt, %25, %26 : vector<8x1xi32>
    %cst_8 = arith.constant 0.000000e+00 : f32
    %28 = vector.broadcast %cst_8 : f32 to vector<8x1xf32>
    %29 = arith.select %27, %21, %28 : vector<8x1xi1>, vector<8x1xf32>
    %c0_9 = arith.constant 0 : index
    %30 = memref.load %arg8[%c0_9] : memref<1xf32, #tpu.memory_space<smem>>
    %31 = vector.shape_cast %29 : vector<8x1xf32> to vector<1x8x1xf32>
    %cst_10 = arith.constant dense<0.000000e+00> : vector<1xf32>
    %32 = vector.multi_reduction <add>, %31, %cst_10 [1, 2] : vector<1x8x1xf32> to vector<1xf32>
    %33 = vector.shape_cast %32 : vector<1xf32> to vector<1x1x1xf32>
    %34 = vector.extract %33[0, 0, 0] : f32 from vector<1x1x1xf32>
    %35 = arith.addf %30, %34 : f32
    %c0_11 = arith.constant 0 : index
    %36 = memref.load %arg8[%c0_11] : memref<1xf32, #tpu.memory_space<smem>>
    memref.store %35, %arg8[%c0_11] : memref<1xf32, #tpu.memory_space<smem>>
    %c0_i32_12 = arith.constant 0 : i32
    %37 = arith.cmpi eq, %arg0, %c0_i32_12 : i32
    %38 = arith.extui %37 : i1 to i32
    %c0_i32_13 = arith.constant 0 : i32
    %39 = arith.cmpi ne, %38, %c0_i32_13 : i32
    scf.if %39 {
      %c0_14 = arith.constant 0 : index
      %40 = memref.load %arg8[%c0_14] : memref<1xf32, #tpu.memory_space<smem>>
      %cst_15 = arith.constant 1.250000e-01 : f32
      %41 = arith.mulf %40, %cst_15 : f32
      %c0_16 = arith.constant 0 : index
      %42 = memref.load %arg9[%c0_16] : memref<1xf32, #tpu.memory_space<smem>>
      %cst_17 = arith.constant 1.250000e-01 : f32
      %43 = arith.mulf %42, %cst_17 : f32
      %c0_18 = arith.constant 0 : index
      %44 = memref.load %arg7[%c0_18] : memref<1xf32, #tpu.memory_space<smem>>
      memref.store %41, %arg7[%c0_18] : memref<1xf32, #tpu.memory_space<smem>>
      %c0_19 = arith.constant 0 : index
      %45 = memref.load %arg6[%c0_19] : memref<1xf32, #tpu.memory_space<smem>>
      memref.store %43, %arg6[%c0_19] : memref<1xf32, #tpu.memory_space<smem>>
      %cst_20 = arith.constant 0.00999999977 : f32
      %46 = arith.mulf %cst_20, %43 : f32
      %47 = arith.addf %46, %41 : f32
      %c0_21 = arith.constant 0 : index
      %48 = memref.load %arg5[%c0_21] : memref<1xf32, #tpu.memory_space<smem>>
      memref.store %47, %arg5[%c0_21] : memref<1xf32, #tpu.memory_space<smem>>
    } else {
    }
    return
  }
  func.func @transform_0(%arg0: i32) -> (i32, i32) {
    %c0_i32 = arith.constant 0 : i32
    %c0_i32_0 = arith.constant 0 : i32
    return %arg0, %c0_i32 : i32, i32
  }
  func.func @transform_1(%arg0: i32) -> (i32, i32) {
    %c0_i32 = arith.constant 0 : i32
    %c0_i32_0 = arith.constant 0 : i32
    return %arg0, %c0_i32 : i32, i32
  }
  func.func @transform_2(%arg0: i32) -> (i32, i32) {
    %c0_i32 = arith.constant 0 : i32
    %c0_i32_0 = arith.constant 0 : i32
    %c0_i32_1 = arith.constant 0 : i32
    return %c0_i32, %c0_i32_0 : i32, i32
  }
  func.func @transform_3(%arg0: i32) -> (i32, i32) {
    %c0_i32 = arith.constant 0 : i32
    %c0_i32_0 = arith.constant 0 : i32
    %c0_i32_1 = arith.constant 0 : i32
    return %c0_i32, %c0_i32_0 : i32, i32
  }
  func.func @transform_4(%arg0: i32) -> i32 {
    %c0_i32 = arith.constant 0 : i32
    %c0_i32_0 = arith.constant 0 : i32
    return %c0_i32 : i32
  }
  func.func @transform_5(%arg0: i32) -> i32 {
    %c0_i32 = arith.constant 0 : i32
    %c0_i32_0 = arith.constant 0 : i32
    return %c0_i32 : i32
  }
  func.func @transform_6(%arg0: i32) -> i32 {
    %c0_i32 = arith.constant 0 : i32
    %c0_i32_0 = arith.constant 0 : i32
    return %c0_i32 : i32
  }
}

</mosaic_0001>

<bundles_post_ra>
// kernel: tpu_custom_call.1
= control target key start
LH: loop header
LB: loop body
LE: loop exit
PB: predicated region body
PF: predicated region fallthrough
CT: control target
= control target key end

     0   :  { %12 = vsyncpa [#allocation5], 0  ;;  %s241_s0 = inlined_call_operand.vmem [shape: f32[8,128], index: 0, kind: input, shape index: {}]   ;;  %s242_s1 = inlined_call_operand.vmem [shape: s32[8,1], index: 1, kind: input, shape index: {}]   ;;  %s243_s2 = inlined_call_operand.vmem [shape: f32[1,8], index: 2, kind: input, shape index: {}]   ;;  %s244_s3 = inlined_call_operand.vmem [shape: f32[1,8], index: 3, kind: input, shape index: {}]   ;;  %s245_s4 = inlined_call_operand.hbm [shape: f32[1], index: 4, kind: output, shape index: {0}]   ;;  %s246_s5 = inlined_call_operand.hbm [shape: f32[1], index: 5, kind: output, shape index: {1}]   ;;  %s247_s6 = inlined_call_operand.hbm [shape: f32[1], index: 6, kind: output, shape index: {2}]  }
   0x1   :  { %v45_v0 = vld [vmem:[%s241_s0] sm:$0xff] }
   0x2   :  { %13 = vsyncpa [#allocation7], 0  ;;  %53 = vmax.xlane.f32.xlu0 %v45_v0  ;;  %v181_v1 = vmov 0   ;;  %v46_v2 = vld [vmem:[%s242_s1] sm:$0xff]  ;;  %v47_v6 = vlaneseq  ;;  %vm32_vm1 = vcmask 57344   ;;  %vm75_vm2 = vcmask 7168  }
   0x3   :  { %148 = vset.pattern.permute.xlu0 %v181_v1  ;;  %v28_v11 = vld [vmem:[%s243_s2] sm:$0x1]  ;;  %s183_s10 = smov [#allocation4]  }
   0x4   :  { %v48_v7 = vand.u32 127, %v47_v6  ;;  %v29_v12 = vld [vmem:[%s244_s3] sm:$0x1]  ;;  %s182_s3 = smov [#allocation6]  }
   0x5   :  { %v30_v13 = vsub.f32 %v28_v11, %v29_v12 }
   0x7   :  { %v31_v14 = vmul.f32 %v30_v13, %v30_v13 }
   0x9   :  { %v33_v15 = vsel %vm32_vm1, %v31_v14, 0.0 }
  0x18   :  { %50 = vperm.xlu0 %148, %v46_v2  }
  0x8b   :  { %v54_v3 = vpop.xlane.xlu0 %53 }
  0x8c   :  { %v55_v4 = vsub.f32 %v45_v0, %v54_v3 }
  0x8e   :  { %v56_v5 = vmul.f32 1.442695, %v55_v4 }
  0x90   :  { %149 = vpow2.f32 %v56_v5 }
  0x93   :  { %v51_v8 = vpop.permute.xlu0 %50 }
  0x94   :  { %vm52_vm0 = vcmp.eq.s32.totalorder %v48_v7, %v51_v8 }
  0x95   :  { %v63_v10 = vsel %vm52_vm0, %v45_v0, 0.0 }
  0x9d   :  { %v150_v9 = vpop.eup %149 }
  0x9e   :  { %58 = vadd.xlane.f32.xlu1 %v150_v9 }
  0xa2   :  { %64 = vadd.xlane.f32.xlu1 %v63_v10 }
  0xa6   :  { %34 = vadd.xlane.f32.xlu1 %v33_v15 }
 0x127   :  { %v59_v16 = vpop.xlane.xlu1 %58 }
 0x128   :  { %151 = vlog2.f32 %v59_v16 }
 0x12b   :  { %v65_v19 = vpop.xlane.xlu1 %64 }
 0x12f   :  { %v35_v23 = vpop.xlane.xlu1 %34 }
 0x130   :  { %v36_v24 = vrot.slane %v35_v23, 4 }
 0x132   :  { %v37_v25 = vadd.f32 %v36_v24, %v35_v23 }
 0x134   :  { %v38_v26 = vrot.slane %v37_v25, 2 }
 0x135   :  { %v152_v17 = vpop.eup %151 }
 0x136   :  { %v61_v18 = vmul.f32 0.6931472, %v152_v17  ;;  %v39_v27 = vadd.f32 %v38_v26, %v37_v25 }
 0x138   :  { %v62_v20 = vadd.f32 %v61_v18, %v54_v3  ;;  %v40_v28 = vrot.slane %v39_v27, 1 }
 0x13a   :  { %v66_v21 = vsub.f32 %v62_v20, %v65_v19  ;;  %v41_v29 = vadd.f32 %v40_v28, %v39_v27 }
 0x13c   :  { %v76_v22 = vsel %vm75_vm2, %v66_v21, 0.0  ;;  %140 = vpush %v41_v29 }
 0x13d   :  { %77 = vadd.xlane.f32.xlu1 %v76_v22 }
 0x16d   :  { %s141_s1 = spop %140 }
 0x16e   :  { %s95_s2 = smul.f32 0.125, %s141_s1 }
 0x170   :  { %99 = sst [smem:[#allocation6]] %s95_s2  ;;  %s100_s30 = smul.f32 0.01, %s95_s2 }
 0x171   :  { %119 = dma.smem_to_hbm %s182_s3, 16, %s246_s5, [#allocation7]  }
 0x172   :  { %s184_s5 = smov [#allocation8]  }
 0x1c6   :  { %v78_v30 = vpop.xlane.xlu1 %77 }
 0x1c7   :  { %v79_v31 = vrot.slane %v78_v30, 4 }
 0x1c9   :  { %v80_v32 = vadd.f32 %v79_v31, %v78_v30 }
 0x1cb   :  { %v81_v33 = vrot.slane %v80_v32, 2 }
 0x1cd   :  { %v82_v34 = vadd.f32 %v81_v33, %v80_v32 }
 0x1cf   :  { %v83_v35 = vrot.slane %v82_v34, 1 }
 0x1d1   :  { %v84_v36 = vadd.f32 %v83_v35, %v82_v34 }
 0x1d3   :  { %142 = vpush %v84_v36 }
 0x204   :  { %s143_s7 = spop %142 }
 0x205   :  { %s93_s8 = smul.f32 0.125, %s143_s7 }
 0x207   :  { %s101_s9 = sadd.f32 %s100_s30, %s93_s8 }
 0x208   :  { %97 = sst [smem:[#allocation8]] %s93_s8 }
 0x209   :  { %103 = sst [smem:[#allocation4]] %s101_s9 }
 0x20a   :  { %111 = dma.smem_to_hbm %s183_s10, 16, %s245_s4, [#allocation5]  }
 0x20b   :  { %127 = dma.smem_to_hbm %s184_s5, 16, %s247_s6, [#allocation7]  }
 0x20c   :  { %177 = dma.done.wait [#allocation5], 16  }
 0x20d   :  { %178 = vsyncadd [#allocation5], 4294967280 }
 0x20e   :  { %179 = dma.done.wait [#allocation7], 32  }
 0x20f   :  { %180 = vsyncadd [#allocation7], 4294967264 }
 0x210   :  { %137 = sfence }
 0x211   :  { %138 = vsyncpa [#allocation5], 1 }
 0x212   :  { %139 = vsyncpa [#allocation7], 1 }

</bundles_post_ra>
